<compile_context>
chip_gen: v7x
topology: tpu7x:2x2x1
jax: 0.10.0
libtpu: 0.0.40
codegen_flags: <defaults>
</compile_context>

<pallas_src>
import functools

import jax
import jax.numpy as jnp
from jax.experimental import pallas as pl
from jax.experimental.pallas import tpu as pltpu


_LANE = 128        # vreg lane width
_SUBLANE = 8       # vreg sublane count
_NEG_BIG = -1e30   # finite "-inf" for padded class columns (kept in f32 bias)


def _round_up(x, m):
    return (x + m - 1) // m * m


# ---------------------------------------------------------------------------
# Pallas kernel:  out = log_softmax(h @ W_packed + b_packed, axis=-1)
# ---------------------------------------------------------------------------
def action_kernel(h_ref, w_ref, b_ref, out_ref):
    # (TILE_B, D)bf16 @ (D, N_pad)bf16 on the MXU, f32 accumulation.
    logits = jnp.dot(h_ref[...], w_ref[...],
                     preferred_element_type=jnp.float32)
    logits = logits + b_ref[...]                      # f32 bias (+ pad sentinel)
    # Numerically-stable log-softmax along the lane (class) axis.
    m = jnp.max(logits, axis=-1, keepdims=True)
    shifted = logits - m
    lse = jnp.log(jnp.sum(jnp.exp(shifted), axis=-1, keepdims=True))
    out_ref[...] = (shifted - lse).astype(out_ref.dtype)


def pack_params(w, b, compute_dtype=jnp.bfloat16):
    """Pack nn.Linear params (w: (out, in), b: (out,)) for the kernel.

    Returns (w_packed: (in, N_pad) in `compute_dtype`, b_packed: (1, N_pad)
    in f32).  The class axis is padded to a multiple of 128: padded columns
    get zero weights and a -1e30 bias, so exp() underflows to 0 and they
    never win the max — log_softmax over the padded axis equals log_softmax
    over the true classes.  The sentinel lives in the f32 bias so it is
    unaffected by the bf16 weight cast.
    """
    out_size, in_size = w.shape
    n_pad = _round_up(out_size, _LANE)
    w_packed = jnp.zeros((in_size, n_pad), compute_dtype)
    w_packed = w_packed.at[:, :out_size].set(w.T.astype(compute_dtype))
    b_packed = jnp.full((1, n_pad), _NEG_BIG, jnp.float32)
    b_packed = b_packed.at[0, :out_size].set(b.astype(jnp.float32))
    return w_packed, b_packed


def _choose_batch_tiling(batch, max_tile_b):
    """Pad batch only to a sublane multiple; split into >=2 roughly equal
    tiles only when the batch is large (v7x has 2 TensorCores)."""
    b_pad = _round_up(batch, _SUBLANE)
    if b_pad >= max_tile_b:
        n_tiles = max(pl.cdiv(b_pad, max_tile_b), 2)
    else:
        n_tiles = 1
    tile_b = _round_up(pl.cdiv(b_pad, n_tiles), _SUBLANE)
    return tile_b, n_tiles, tile_b * n_tiles


@functools.partial(jax.jit,
                   static_argnames=("num_classes", "max_tile_b", "out_dtype"))
def action_network_forward(h_t, w_packed, b_packed, *, num_classes,
                           max_tile_b=256, out_dtype=jnp.float32):
    """a_t = log_softmax(fc(h_t), dim=1), fused in one Pallas kernel.

    Pass out_dtype=jnp.bfloat16 to halve the output HBM traffic if the
    consumer tolerates bf16 log-probs.
    """
    B, D = h_t.shape
    n_pad = w_packed.shape[1]
    compute_dtype = w_packed.dtype

    tile_b, n_tiles, b_pad = _choose_batch_tiling(B, max_tile_b)

    h = h_t.astype(compute_dtype)
    if b_pad != B:
        h = jnp.pad(h, ((0, b_pad - B), (0, 0)))

    itemsize = lambda dt: jnp.dtype(dt).itemsize
    cost = pl.CostEstimate(
        flops=2 * b_pad * D * n_pad,
        transcendentals=b_pad * (n_pad + 1),          # exp per class + log
        bytes_accessed=(b_pad * D * itemsize(compute_dtype)
                        + D * n_pad * itemsize(compute_dtype)
                        + n_pad * 4
                        + b_pad * n_pad * itemsize(out_dtype)),
    )

    out = pl.pallas_call(
        action_kernel,
        out_shape=jax.ShapeDtypeStruct((b_pad, n_pad), out_dtype),
        grid=(n_tiles,),
        in_specs=[
            pl.BlockSpec((tile_b, D), lambda i: (i, 0)),   # h_t batch tile (bf16)
            pl.BlockSpec((D, n_pad), lambda i: (0, 0)),    # packed weight (bf16)
            pl.BlockSpec((1, n_pad), lambda i: (0, 0)),    # packed bias (f32)
        ],
        out_specs=pl.BlockSpec((tile_b, n_pad), lambda i: (i, 0)),
        compiler_params=pltpu.CompilerParams(
            dimension_semantics=("parallel",)),
        cost_estimate=cost,
    )(h, w_packed, b_packed)

    # Strip batch + class padding (keeps the exact PyTorch output shape).
    # TODO(synk): let the consumer read the padded, lane-dense (b_pad, n_pad)
    # slab directly to avoid this non-lane-dense XLA slice at tiny shapes.
    return out[:B, :num_classes]

    # TODO(synk): when this head runs per-RNN-timestep at tiny B, batch many
    # timesteps into one call (or fuse with the core-network kernel) — launch
    # overhead dominates at (8,256)@(256,128).
    # TODO(synk): for very large num_classes/D, tile N with an online
    # (running max/sum) log-softmax, single-buffer the invariant weight
    # (pipeline_mode=pl.Buffered(1)) and set vmem_limit_bytes explicitly so
    # the working set fits v7x's 64 MiB VMEM.


if __name__ == "__main__":
    # action_network hyperparameters: core-network hidden size -> #classes.
    input_size = 256
    output_size = 10
    B = 2

    key = jax.random.PRNGKey(0)
    kh, kw, kb = jax.random.split(key, 3)
    h_t = jax.random.normal(kh, (B, input_size), jnp.float32)
    # nn.Linear-convention parameters: weight (out, in), bias (out,)
    w = jax.random.normal(kw, (output_size, input_size), jnp.float32) * 0.05
    b = jax.random.normal(kb, (output_size,), jnp.float32) * 0.05

    w_packed, b_packed = pack_params(w, b)          # bf16 weight, f32 bias

    a_t = action_network_forward(h_t, w_packed, b_packed,
                                 num_classes=output_size)
    a_t = jax.block_until_ready(a_t)
    assert a_t.shape == (B, output_size)

    # Tight check against a reference using the same bf16-quantized inputs
    # (the kernel accumulates those exact values in f32 on the MXU).
    hq = h_t.astype(jnp.bfloat16).astype(jnp.float32)
    wq = w.astype(jnp.bfloat16).astype(jnp.float32)
    logits_q = jnp.einsum("bd,cd->bc", hq, wq,
                          precision=jax.lax.Precision.HIGHEST) + b
    ref_q = jax.nn.log_softmax(logits_q, axis=1)
    assert jnp.allclose(a_t, ref_q, atol=2e-3, rtol=2e-3)

    # Looser check against the full-f32 module semantics (bf16 input quant).
    ref_f32 = jax.nn.log_softmax(h_t @ w.T + b, axis=1)
    assert jnp.allclose(a_t, ref_f32, atol=5e-2, rtol=5e-2)

    # Exercise the multi-tile / parallel-grid path with minimal padding:
    # B=300 -> pad to 304 rows, 2 tiles of 152 (both TensorCores on v7x).
    B2 = 300
    h2 = jax.random.normal(jax.random.PRNGKey(1), (B2, input_size),
                           jnp.float32)
    a2 = jax.block_until_ready(
        action_network_forward(h2, w_packed, b_packed,
                               num_classes=output_size))
    assert a2.shape == (B2, output_size)
    h2q = h2.astype(jnp.bfloat16).astype(jnp.float32)
    logits2_q = jnp.einsum("bd,cd->bc", h2q, wq,
                           precision=jax.lax.Precision.HIGHEST) + b
    ref2_q = jax.nn.log_softmax(logits2_q, axis=1)
    assert jnp.allclose(a2, ref2_q, atol=2e-3, rtol=2e-3)
    ref2_f32 = jax.nn.log_softmax(h2 @ w.T + b, axis=1)
    assert jnp.allclose(a2, ref2_f32, atol=5e-2, rtol=5e-2)

    print("KERNEL_OK")
</pallas_src>

<mosaic_0001>
module attributes {stable_mosaic.version = 11 : i64} {
  func.func @action_kernel(%arg0: i32, %arg1: memref<8x256xbf16, #tpu.memory_space<vmem>>, %arg2: memref<256x128xbf16, #tpu.memory_space<vmem>>, %arg3: memref<1x128xf32, #tpu.memory_space<vmem>>, %arg4: memref<8x128xf32, #tpu.memory_space<vmem>>) attributes {dimension_semantics = [#tpu.dimension_semantics<parallel>], iteration_bounds = array<i64: 1>, scalar_prefetch = 0 : i64, scratch_operands = 0 : i64, tpu.core_type = #tpu.core_type<tc>, window_params = [{transform_indices = @transform_0, window_bounds = array<i64: 8, 256>}, {pipeline_mode = #tpu.pipeline_mode<synchronous>, transform_indices = @transform_1, window_bounds = array<i64: 256, 128>}, {pipeline_mode = #tpu.pipeline_mode<synchronous>, transform_indices = @transform_2, window_bounds = array<i64: 1, 128>}, {transform_indices = @transform_3, window_bounds = array<i64: 8, 128>}]} {
    %c0 = arith.constant 0 : index
    %c0_0 = arith.constant 0 : index
    %0 = vector.load %arg1[%c0, %c0_0] : memref<8x256xbf16, #tpu.memory_space<vmem>>, vector<8x256xbf16>
    %c0_1 = arith.constant 0 : index
    %c0_2 = arith.constant 0 : index
    %1 = vector.load %arg2[%c0_1, %c0_2] : memref<256x128xbf16, #tpu.memory_space<vmem>>, vector<256x128xbf16>
    %cst = arith.constant dense<0.000000e+00> : vector<8x128xf32>
    %2 = tpu.matmul %0, %1, %cst {dimension_numbers = #tpu.dot_dimension_numbers<[1], [0], [0], [1], [0, 0, 1, 1], [], []>} : vector<8x256xbf16>, vector<256x128xbf16>, vector<8x128xf32> -> vector<8x128xf32>
    %c0_3 = arith.constant 0 : index
    %c0_4 = arith.constant 0 : index
    %3 = vector.load %arg3[%c0_3, %c0_4] : memref<1x128xf32, #tpu.memory_space<vmem>>, vector<1x128xf32>
    %4 = vector.broadcast %3 : vector<1x128xf32> to vector<8x128xf32>
    %5 = arith.addf %2, %4 : vector<8x128xf32>
    %cst_5 = arith.constant dense<0xFF800000> : vector<8xf32>
    %6 = vector.multi_reduction <maximumf>, %5, %cst_5 [1] : vector<8x128xf32> to vector<8xf32>
    %7 = vector.shape_cast %6 : vector<8xf32> to vector<8x1xf32>
    %8 = vector.broadcast %7 : vector<8x1xf32> to vector<8x128xf32>
    %9 = arith.subf %5, %8 : vector<8x128xf32>
    %10 = math.exp %9 : vector<8x128xf32>
    %cst_6 = arith.constant dense<0.000000e+00> : vector<8xf32>
    %11 = vector.multi_reduction <add>, %10, %cst_6 [1] : vector<8x128xf32> to vector<8xf32>
    %12 = vector.shape_cast %11 : vector<8xf32> to vector<8x1xf32>
    %13 = math.log %12 : vector<8x1xf32>
    %14 = vector.broadcast %13 : vector<8x1xf32> to vector<8x128xf32>
    %15 = arith.subf %9, %14 : vector<8x128xf32>
    %c0_7 = arith.constant 0 : index
    %c0_8 = arith.constant 0 : index
    %16 = vector.load %arg4[%c0_7, %c0_8] : memref<8x128xf32, #tpu.memory_space<vmem>>, vector<8x128xf32>
    tpu.vector_store %arg4[%c0_7, %c0_8], %15 {strides = array<i32>} : memref<8x128xf32, #tpu.memory_space<vmem>>, vector<8x128xf32>,
    return
  }
  func.func @transform_0(%arg0: i32) -> (i32, i32) {
    %c0_i32 = arith.constant 0 : i32
    %c0_i32_0 = arith.constant 0 : i32
    return %arg0, %c0_i32 : i32, i32
  }
  func.func @transform_1(%arg0: i32) -> (i32, i32) {
    %c0_i32 = arith.constant 0 : i32
    %c0_i32_0 = arith.constant 0 : i32
    %c0_i32_1 = arith.constant 0 : i32
    return %c0_i32, %c0_i32_0 : i32, i32
  }
  func.func @transform_2(%arg0: i32) -> (i32, i32) {
    %c0_i32 = arith.constant 0 : i32
    %c0_i32_0 = arith.constant 0 : i32
    %c0_i32_1 = arith.constant 0 : i32
    return %c0_i32, %c0_i32_0 : i32, i32
  }
  func.func @transform_3(%arg0: i32) -> (i32, i32) {
    %c0_i32 = arith.constant 0 : i32
    %c0_i32_0 = arith.constant 0 : i32
    return %arg0, %c0_i32 : i32, i32
  }
}

</mosaic_0001>

<bundles_post_ra>
// kernel: action_network_forward.1
= control target key start
LH: loop header
LB: loop body
LE: loop exit
PB: predicated region body
PF: predicated region fallthrough
CT: control target
= control target key end

     0   :  { %8 = vsyncpa [#allocation3], 0  ;;  %s318_s12 = smov [#allocation2]   ;;  %s362_s0 = inlined_call_operand.vmem [shape: bf16[8,256], index: 0, kind: input, shape index: {}]   ;;  %s363_s1 = inlined_call_operand.hbm [shape: bf16[256,128], index: 1, kind: input, shape index: {}]   ;;  %s364_s2 = inlined_call_operand.vmem [shape: f32[1,128], index: 2, kind: input, shape index: {}]   ;;  %s365_s3 = inlined_call_operand.vmem [shape: f32[8,128], index: 3, kind: output, shape index: {}]  }
   0x1   :  { %s16_s13 = sshll.u32 %s318_s12, 4  ;;  %s294_s16 = scalar_lea.hbm %s363_s1, 2048  ;;  %s17_s13 = int_to_ptr.vmem [resolvable:$true] %s16_s13 }
   0x2   :  { %p295_p0 = scmp.ne.s32.totalorder %s363_s1, %s294_s16  ;;  %p298_p1 = scmp.lt.u32.totalorder %s294_s16, %s363_s1 }
   0x4   :  { %p300_p2 = pnand %p298_p1, %p295_p0 }
   0x6   :  { %303 = shalt.err (!%p300_p2)
}
   0x7   :  { %s304_s21 = scalar_lea.vmem %s17_s13, 2048  ;;  %p309_p4 = scmp.lt.s32.totalorder %s17_s13, %s17_s13 }
   0x8   :  { %p305_p3 = scmp.ne.s32.totalorder %s17_s13, %s304_s21  ;;  %p310_p5 = scmp.lt.s32.totalorder %s304_s21, %s304_s21 }
   0xa   :  { %p311_p6 = por %p310_p5, %p309_p4 }
   0xc   :  { %p312_p7 = pnand %p311_p6, %p305_p3 }
   0xe   :  { %315 = shalt.err (!%p312_p7)
}
   0xf   :  { %s319_s22 = smov 64   ;;  %s320_s23 = smov 4  }
  0x10   :  { %22 = dma.hbm_to_vmem [thread:$0]  %s363_s1, 2048, %s17_s13, [#allocation3], %s319_s22, %s319_s22, %s320_s23  }
  0x11   :  { %316 = dma.done.wait [#allocation3], 2048  }
  0x12   :  { %317 = vsyncadd [#allocation3], 4294965248  ;;  %v272_v0 = vld [vmem:[#allocation2 + $0x40] sm:$0xff]   ;;  %v274_v2 = vld [vmem:[#allocation2 + $0x48] sm:$0xff]  }
  0x13   :  { %v273_v1 = vld [vmem:[#allocation2] sm:$0xff]   ;;  %247 = vmatprep.subr.bf16.mxu0 %v272_v0  ;;  %v275_v3 = vld [vmem:[#allocation2 + $0x8] sm:$0xff]   ;;  %v276_v4 = vld [vmem:[#allocation2 + $0x50] sm:$0xff]  }
  0x14   :  { %248 = vmatpush3.bf16.msra.mxu0 %v273_v1  ;;  %v277_v5 = vld [vmem:[#allocation2 + $0x10] sm:$0xff]   ;;  %v278_v6 = vld [vmem:[#allocation2 + $0x58] sm:$0xff]   ;;  %v280_v8 = vld [vmem:[#allocation2 + $0x60] sm:$0xff]  }
  0x15   :  { %249 = vmatprep.subr.bf16.mxu0 %v274_v2  ;;  %v279_v7 = vld [vmem:[#allocation2 + $0x18] sm:$0xff]   ;;  %v281_v9 = vld [vmem:[#allocation2 + $0x20] sm:$0xff]   ;;  %v282_v10 = vld [vmem:[#allocation2 + $0x68] sm:$0xff]  }
  0x16   :  { %v29_v11 = vld [vmem:[%s362_s0] sm:$0xff]  ;;  %v283_v13 = vld [vmem:[#allocation2 + $0x28] sm:$0xff]   ;;  %v284_v14 = vld [vmem:[#allocation2 + $0x70] sm:$0xff]  }
  0x17   :  { %v230_v12 = vcombine.high %v29_v11, %v29_v11  ;;  %v285_v15 = vld [vmem:[#allocation2 + $0x30] sm:$0xff]   ;;  %v286_v16 = vld [vmem:[#allocation2 + $0x78] sm:$0xff]   ;;  %v229_v18 = vcombine.low %v29_v11, %v29_v11  ;;  %v228_v21 = vld [vmem:[%s364_s2] ss:$0 sm:$0xff] }
  0x18   :  { %250 = vmatpush3.bf16.msra.mxu0 %v275_v3  ;;  %v287_v17 = vld [vmem:[#allocation2 + $0x38] sm:$0xff]  }
  0x19   :  { %251 = vmatprep.subr.bf16.mxu0 %v276_v4  ;;  %204 = vmatprep.mubr.bf16.mxu0 %v230_v12 }
  0x1c   :  { %252 = vmatpush3.bf16.msra.mxu0 %v277_v5 }
  0x1d   :  { %253 = vmatprep.subr.bf16.mxu0 %v278_v6 }
  0x20   :  { %254 = vmatpush3.bf16.msra.mxu0 %v279_v7 }
  0x21   :  { %255 = vmatprep.subr.bf16.mxu0 %v280_v8 }
  0x24   :  { %256 = vmatpush3.bf16.msra.mxu0 %v281_v9 }
  0x25   :  { %257 = vmatprep.subr.bf16.mxu0 %v282_v10 }
  0x28   :  { %258 = vmatpush3.bf16.msra.mxu0 %v283_v13 }
  0x29   :  { %259 = vmatprep.subr.bf16.mxu0 %v284_v14 }
  0x2c   :  { %260 = vmatpush3.bf16.msra.mxu0 %v285_v15 }
  0x2d   :  { %261 = vmatprep.subr.bf16.mxu0 %v286_v16 }
  0x30   :  { %262 = vmatpush3.bf16.msra.mxu0 %v287_v17 }
  0x33   :  { %205 = vmatmul.mubr.bf16.vlgmr.msra.gmra.mrb[0].mxu0 %v229_v18 }
 0x106   :  { %v263_v19 = vpop.f32.mrb[0].mxu0 }
 0x107   :  { %v264_v20 = vpop.f32.mrb[1].mxu0 }
 0x108   :  { %v265_v22 = vadd.f32 %v264_v20, %v263_v19  ;;  %v266_v23 = vpop.f32.mrb[2].mxu0 }
 0x109   :  { %v267_v24 = vpop.f32.mrb[3].mxu0 }
 0x10a   :  { %v207_v25 = vadd.f32 %v265_v22, %v228_v21 }
 0x10c   :  { %212 = vmax.xlane.f32.xlu0 %v207_v25 }
 0x199   :  { %v213_v26 = vpop.xlane.xlu0 %212 }
 0x19a   :  { %v214_v27 = vsub.f32 %v207_v25, %v213_v26 }
 0x19c   :  { %v215_v28 = vmul.f32 1.442695, %v214_v27 }
 0x19e   :  { %290 = vpow2.f32 %v215_v28 }
 0x1a8   :  { %v291_v29 = vpop.eup %290 }
 0x1a9   :  { %217 = vadd.xlane.f32.xlu0 %v291_v29 }
 0x236   :  { %v218_v30 = vpop.xlane.xlu0 %217 }
 0x237   :  { %292 = vlog2.f32 %v218_v30 }
 0x241   :  { %v293_v31 = vpop.eup %292 }
 0x242   :  { %v220_v32 = vmul.f32 0.6931472, %v293_v31 }
 0x244   :  { %v221_v33 = vsub.f32 %v214_v27, %v220_v32 }
 0x246   :  { %222 = vst [vmem:[%s365_s3] sm:$0xff] %v221_v33 }
 0x247   :  { %227 = vsyncpa [#allocation3], 1 }

</bundles_post_ra>
